<compile_context>
chip_gen: v7x
topology: tpu7x:2x2x1
jax: 0.10.0
libtpu: 0.0.40
codegen_flags: <defaults>
</compile_context>

<pallas_src>
import functools

import jax
import jax.numpy as jnp
from jax.experimental import pallas as pl
from jax.experimental.pallas import tpu as pltpu


def _rn_kernel(x_ref, lab_ref, o_ref, *, nb, hw, eps):
    """x_ref: (nb, TC, HW)  lab_ref: (nb, 1, HW)  o_ref: (nb, TC, HW)."""

    def body(i, carry):
        x = x_ref[i].astype(jnp.float32)            # (TC, HW)
        lab = lab_ref[i].astype(jnp.float32)        # (1, HW), binary {0,1}

        # --- single pass: 3 elementwise products + 5 lane reductions --------------
        xl = x * lab                                # x restricted to foreground
        x2 = x * x
        x2l = x2 * lab

        s1f = jnp.sum(xl, axis=1, keepdims=True)    # (TC, 1)
        s2f = jnp.sum(x2l, axis=1, keepdims=True)   # (TC, 1)
        s1 = jnp.sum(x, axis=1, keepdims=True)      # (TC, 1)
        s2 = jnp.sum(x2, axis=1, keepdims=True)     # (TC, 1)
        srf = jnp.sum(lab, axis=1, keepdims=True)   # (1, 1)

        # --- background stats by subtraction; Sr == 0 -> 1 guard as in the reference
        srb = hw - srf
        srf = jnp.where(srf == 0.0, 1.0, srf)
        srb = jnp.where(srb == 0.0, 1.0, srb)
        inv_f = 1.0 / srf                           # EUP reciprocal
        inv_b = 1.0 / srb

        s1b = s1 - s1f
        s2b = s2 - s2f
        mu_f = s1f * inv_f                          # (TC, 1)
        mu_b = s1b * inv_b
        # Reference sums (region - mu)^2 over the FULL HxW (including the (0-mu)^2
        # terms from the opposite region), then divides by Sr:
        #   sum_{HW}(region - mu)^2 = S2r - 2*mu*S1r + HW*mu^2
        var_f = (s2f - 2.0 * mu_f * s1f + hw * mu_f * mu_f) * inv_f + eps
        var_b = (s2b - 2.0 * mu_b * s1b + hw * mu_b * mu_b) * inv_b + eps
        rs_f = jax.lax.rsqrt(var_f)                 # (TC, 1)
        rs_b = jax.lax.rsqrt(var_b)

        # --- select-fused recombination: label is binary, so on fg pixels the fg
        # term equals (x - mu_f) * rs_f and the bg term is masked out (and vice versa)
        fg = lab != 0.0                             # (1, HW)
        mu_sel = jnp.where(fg, mu_f, mu_b)          # (TC, HW)
        rs_sel = jnp.where(fg, rs_f, rs_b)          # (TC, HW)
        o_ref[i] = ((x - mu_sel) * rs_sel).astype(o_ref.dtype)
        return carry

    jax.lax.fori_loop(0, nb, body, 0)


def _pick_tiles(B, C, HW, itemsize):
    """Choose (images per grid step, channel tile, #channel tiles) under a portable
    VMEM budget that counts both the double-buffered DMA blocks and the f32 working
    set of the one image live inside the fori_loop."""
    budget = 16 << 20                               # headroom under the 32 MiB scoped default
    f32 = 4

    def vmem_bytes(nb, tc):
        pipeline = 2 * nb * (2 * tc * HW * itemsize + HW * itemsize)  # x-in + out + label, x2 buffers
        working = 6 * tc * HW * f32                                   # in-kernel f32 intermediates
        return pipeline + working

    # Channel tile: full C when it fits, else the largest multiple of 8 that does.
    # (No HW tiling fallback: the single-pass stats need the full HW extent.)
    tc = C
    while vmem_bytes(1, tc) > budget and tc > 8:
        tc = max(8, ((tc // 2) + 7) // 8 * 8)
    n_ct = pl.cdiv(C, tc)

    # Images per grid step: largest divisor of B that fits, keeping >= 2 total grid
    # steps when possible so both v7x TensorCores / megacore get work.
    nb = 1
    for cand in range(1, B + 1):
        if B % cand != 0 or vmem_bytes(cand, tc) > budget:
            continue
        if (B // cand) * n_ct >= 2 or cand == 1:
            nb = cand
    return nb, tc, n_ct


def rn_binarylabel(x, label, *, eps=1e-5):
    """x: (B, C, M, N); label: (B, 1, M, N) binary.  Returns (B, C, M, N)."""
    B, C, M, N = x.shape
    HW = M * N                                      # lane axis; unmasked stores when HW % 128 == 0
    xf = x.reshape(B, C, HW)
    # TODO(synk): an int8/bool label DMA would cut HBM reads further on mem-bound v5e;
    # kept in x.dtype here for lowering portability.
    lf = label.astype(x.dtype).reshape(B, 1, HW)

    nb, tc, n_ct = _pick_tiles(B, C, HW, x.dtype.itemsize)
    grid = (B // nb, n_ct)

    out = pl.pallas_call(
        functools.partial(_rn_kernel, nb=nb, hw=float(HW), eps=float(eps)),
        out_shape=jax.ShapeDtypeStruct((B, C, HW), x.dtype),
        grid_spec=pltpu.PrefetchScalarGridSpec(
            num_scalar_prefetch=0,
            grid=grid,
            in_specs=[
                pl.BlockSpec((nb, tc, HW), lambda gb, gc: (gb, gc, 0)),
                pl.BlockSpec((nb, 1, HW), lambda gb, gc: (gb, 0, 0)),
            ],
            out_specs=pl.BlockSpec((nb, tc, HW), lambda gb, gc: (gb, gc, 0)),
        ),
        compiler_params=pltpu.CompilerParams(
            dimension_semantics=("parallel", "parallel"),
            vmem_limit_bytes=32 << 20,
        ),
    )(xf, lf)
    return out.reshape(B, C, M, N)


def _rn_ref(region, mask, eps=1e-5):
    """Pure-JAX mirror of RN_binarylabel.rn (NCHW)."""
    s = jnp.sum(region, axis=(2, 3))                       # (B, C)
    sr = jnp.sum(mask, axis=(2, 3))                        # (B, 1)
    sr = jnp.where(sr == 0, 1.0, sr)
    mu = s / sr                                            # (B, C)
    std = jnp.sqrt(
        jnp.sum((region - mu[:, :, None, None]) ** 2, axis=(2, 3)) / sr + eps)
    return (region - mu[:, :, None, None]) / std[:, :, None, None] * mask


def _ref_forward(x, label):
    fg = _rn_ref(x * label, label)
    bg = _rn_ref(x * (1.0 - label), 1.0 - label)
    return fg + bg


if __name__ == "__main__":
    key = jax.random.PRNGKey(0)
    kx, kl = jax.random.split(key)

    B, C, M, N = 2, 4, 16, 16
    x = jax.random.normal(kx, (B, C, M, N), dtype=jnp.float32)
    label = jax.random.bernoulli(kl, 0.5, (B, 1, M, N)).astype(jnp.float32)

    out = rn_binarylabel(x, label)
    jax.block_until_ready(out)

    ref = _ref_forward(x, label)
    assert out.shape == (B, C, M, N)
    err = float(jnp.max(jnp.abs(out - ref)))
    assert jnp.allclose(out, ref, rtol=1e-4, atol=1e-4), err

    print("KERNEL_OK")
</pallas_src>

<mosaic_0001>
module attributes {stable_mosaic.version = 11 : i64} {
  func.func @_rn_kernel(%arg0: i32, %arg1: i32, %arg2: memref<1x4x256xf32, #tpu.memory_space<vmem>>, %arg3: memref<1x1x256xf32, #tpu.memory_space<vmem>>, %arg4: memref<1x4x256xf32, #tpu.memory_space<vmem>>) attributes {dimension_semantics = [#tpu.dimension_semantics<parallel>, #tpu.dimension_semantics<parallel>], iteration_bounds = array<i64: 2, 1>, scalar_prefetch = 0 : i64, scratch_operands = 0 : i64, tpu.core_type = #tpu.core_type<tc>, window_params = [{transform_indices = @transform_0, window_bounds = array<i64: 1, 4, 256>}, {transform_indices = @transform_1, window_bounds = array<i64: 1, 1, 256>}, {transform_indices = @transform_2, window_bounds = array<i64: 1, 4, 256>}]} {
    %c0_i32 = arith.constant 0 : i32
    %0 = arith.index_cast %c0_i32 : i32 to index
    %c0 = arith.constant 0 : index
    %c0_0 = arith.constant 0 : index
    %1 = vector.load %arg2[%0, %c0, %c0_0] : memref<1x4x256xf32, #tpu.memory_space<vmem>>, vector<1x4x256xf32>
    %2 = vector.shape_cast %1 : vector<1x4x256xf32> to vector<4x256xf32>
    %3 = arith.index_cast %c0_i32 : i32 to index
    %c0_1 = arith.constant 0 : index
    %c0_2 = arith.constant 0 : index
    %4 = vector.load %arg3[%3, %c0_1, %c0_2] : memref<1x1x256xf32, #tpu.memory_space<vmem>>, vector<1x1x256xf32>
    %5 = vector.shape_cast %4 : vector<1x1x256xf32> to vector<1x256xf32>
    %6 = vector.broadcast %5 : vector<1x256xf32> to vector<4x256xf32>
    %7 = arith.mulf %2, %6 : vector<4x256xf32>
    %8 = arith.mulf %2, %2 : vector<4x256xf32>
    %9 = vector.broadcast %5 : vector<1x256xf32> to vector<4x256xf32>
    %10 = arith.mulf %8, %9 : vector<4x256xf32>
    %cst = arith.constant dense<0.000000e+00> : vector<4xf32>
    %11 = vector.multi_reduction <add>, %7, %cst [1] : vector<4x256xf32> to vector<4xf32>
    %12 = vector.shape_cast %11 : vector<4xf32> to vector<4x1xf32>
    %cst_3 = arith.constant dense<0.000000e+00> : vector<4xf32>
    %13 = vector.multi_reduction <add>, %10, %cst_3 [1] : vector<4x256xf32> to vector<4xf32>
    %14 = vector.shape_cast %13 : vector<4xf32> to vector<4x1xf32>
    %cst_4 = arith.constant dense<0.000000e+00> : vector<4xf32>
    %15 = vector.multi_reduction <add>, %2, %cst_4 [1] : vector<4x256xf32> to vector<4xf32>
    %16 = vector.shape_cast %15 : vector<4xf32> to vector<4x1xf32>
    %cst_5 = arith.constant dense<0.000000e+00> : vector<4xf32>
    %17 = vector.multi_reduction <add>, %8, %cst_5 [1] : vector<4x256xf32> to vector<4xf32>
    %18 = vector.shape_cast %17 : vector<4xf32> to vector<4x1xf32>
    %cst_6 = arith.constant dense<0.000000e+00> : vector<1xf32>
    %19 = vector.multi_reduction <add>, %5, %cst_6 [1] : vector<1x256xf32> to vector<1xf32>
    %20 = vector.shape_cast %19 : vector<1xf32> to vector<1x1xf32>
    %cst_7 = arith.constant 2.560000e+02 : f32
    %21 = vector.broadcast %cst_7 : f32 to vector<1x1xf32>
    %22 = arith.subf %21, %20 : vector<1x1xf32>
    %cst_8 = arith.constant 0.000000e+00 : f32
    %23 = vector.broadcast %cst_8 : f32 to vector<1x1xf32>
    %24 = arith.cmpf oeq, %20, %23 : vector<1x1xf32>
    %cst_9 = arith.constant 1.000000e+00 : f32
    %25 = vector.broadcast %cst_9 : f32 to vector<1x1xf32>
    %26 = arith.select %24, %25, %20 : vector<1x1xi1>, vector<1x1xf32>
    %cst_10 = arith.constant 0.000000e+00 : f32
    %27 = vector.broadcast %cst_10 : f32 to vector<1x1xf32>
    %28 = arith.cmpf oeq, %22, %27 : vector<1x1xf32>
    %cst_11 = arith.constant 1.000000e+00 : f32
    %29 = vector.broadcast %cst_11 : f32 to vector<1x1xf32>
    %30 = arith.select %28, %29, %22 : vector<1x1xi1>, vector<1x1xf32>
    %cst_12 = arith.constant 1.000000e+00 : f32
    %31 = vector.broadcast %cst_12 : f32 to vector<1x1xf32>
    %32 = arith.divf %31, %26 : vector<1x1xf32>
    %cst_13 = arith.constant 1.000000e+00 : f32
    %33 = vector.broadcast %cst_13 : f32 to vector<1x1xf32>
    %34 = arith.divf %33, %30 : vector<1x1xf32>
    %35 = arith.subf %16, %12 : vector<4x1xf32>
    %36 = arith.subf %18, %14 : vector<4x1xf32>
    %37 = vector.broadcast %32 : vector<1x1xf32> to vector<4x1xf32>
    %38 = arith.mulf %12, %37 : vector<4x1xf32>
    %39 = vector.broadcast %34 : vector<1x1xf32> to vector<4x1xf32>
    %40 = arith.mulf %35, %39 : vector<4x1xf32>
    %cst_14 = arith.constant 2.000000e+00 : f32
    %41 = vector.broadcast %cst_14 : f32 to vector<4x1xf32>
    %42 = arith.mulf %41, %38 : vector<4x1xf32>
    %43 = arith.mulf %42, %12 : vector<4x1xf32>
    %44 = arith.subf %14, %43 : vector<4x1xf32>
    %cst_15 = arith.constant 2.560000e+02 : f32
    %45 = vector.broadcast %cst_15 : f32 to vector<4x1xf32>
    %46 = arith.mulf %45, %38 : vector<4x1xf32>
    %47 = arith.mulf %46, %38 : vector<4x1xf32>
    %48 = arith.addf %44, %47 : vector<4x1xf32>
    %49 = vector.broadcast %32 : vector<1x1xf32> to vector<4x1xf32>
    %50 = arith.mulf %48, %49 : vector<4x1xf32>
    %cst_16 = arith.constant 9.99999974E-6 : f32
    %51 = vector.broadcast %cst_16 : f32 to vector<4x1xf32>
    %52 = arith.addf %50, %51 : vector<4x1xf32>
    %cst_17 = arith.constant 2.000000e+00 : f32
    %53 = vector.broadcast %cst_17 : f32 to vector<4x1xf32>
    %54 = arith.mulf %53, %40 : vector<4x1xf32>
    %55 = arith.mulf %54, %35 : vector<4x1xf32>
    %56 = arith.subf %36, %55 : vector<4x1xf32>
    %cst_18 = arith.constant 2.560000e+02 : f32
    %57 = vector.broadcast %cst_18 : f32 to vector<4x1xf32>
    %58 = arith.mulf %57, %40 : vector<4x1xf32>
    %59 = arith.mulf %58, %40 : vector<4x1xf32>
    %60 = arith.addf %56, %59 : vector<4x1xf32>
    %61 = vector.broadcast %34 : vector<1x1xf32> to vector<4x1xf32>
    %62 = arith.mulf %60, %61 : vector<4x1xf32>
    %cst_19 = arith.constant 9.99999974E-6 : f32
    %63 = vector.broadcast %cst_19 : f32 to vector<4x1xf32>
    %64 = arith.addf %62, %63 : vector<4x1xf32>
    %65 = math.rsqrt %52 : vector<4x1xf32>
    %66 = math.rsqrt %64 : vector<4x1xf32>
    %cst_20 = arith.constant 0.000000e+00 : f32
    %67 = vector.broadcast %cst_20 : f32 to vector<1x256xf32>
    %68 = arith.cmpf one, %5, %67 : vector<1x256xf32>
    %69 = vector.shape_cast %68 : vector<1x256xi1> to vector<1x256xi1>
    %70 = vector.broadcast %69 : vector<1x256xi1> to vector<4x256xi1>
    %71 = vector.shape_cast %38 : vector<4x1xf32> to vector<4x1xf32>
    %72 = vector.broadcast %71 : vector<4x1xf32> to vector<4x256xf32>
    %73 = vector.shape_cast %40 : vector<4x1xf32> to vector<4x1xf32>
    %74 = vector.broadcast %73 : vector<4x1xf32> to vector<4x256xf32>
    %75 = arith.select %70, %72, %74 : vector<4x256xi1>, vector<4x256xf32>
    %76 = vector.shape_cast %68 : vector<1x256xi1> to vector<1x256xi1>
    %77 = vector.broadcast %76 : vector<1x256xi1> to vector<4x256xi1>
    %78 = vector.shape_cast %65 : vector<4x1xf32> to vector<4x1xf32>
    %79 = vector.broadcast %78 : vector<4x1xf32> to vector<4x256xf32>
    %80 = vector.shape_cast %66 : vector<4x1xf32> to vector<4x1xf32>
    %81 = vector.broadcast %80 : vector<4x1xf32> to vector<4x256xf32>
    %82 = arith.select %77, %79, %81 : vector<4x256xi1>, vector<4x256xf32>
    %83 = arith.subf %2, %75 : vector<4x256xf32>
    %84 = arith.mulf %83, %82 : vector<4x256xf32>
    %85 = arith.index_cast %c0_i32 : i32 to index
    %c0_21 = arith.constant 0 : index
    %c0_22 = arith.constant 0 : index
    %86 = vector.load %arg4[%85, %c0_21, %c0_22] : memref<1x4x256xf32, #tpu.memory_space<vmem>>, vector<1x4x256xf32>
    %87 = vector.shape_cast %86 : vector<1x4x256xf32> to vector<4x256xf32>
    %88 = vector.shape_cast %84 : vector<4x256xf32> to vector<1x4x256xf32>
    tpu.vector_store %arg4[%85, %c0_21, %c0_22], %88 {strides = array<i32>} : memref<1x4x256xf32, #tpu.memory_space<vmem>>, vector<1x4x256xf32>,
    %c1_i32 = arith.constant 1 : i32
    return
  }
  func.func @transform_0(%arg0: i32, %arg1: i32) -> (i32, i32, i32) {
    %c0_i32 = arith.constant 0 : i32
    %c0_i32_0 = arith.constant 0 : i32
    return %arg0, %arg1, %c0_i32 : i32, i32, i32
  }
  func.func @transform_1(%arg0: i32, %arg1: i32) -> (i32, i32, i32) {
    %c0_i32 = arith.constant 0 : i32
    %c0_i32_0 = arith.constant 0 : i32
    %c0_i32_1 = arith.constant 0 : i32
    return %arg0, %c0_i32, %c0_i32_0 : i32, i32, i32
  }
  func.func @transform_2(%arg0: i32, %arg1: i32) -> (i32, i32, i32) {
    %c0_i32 = arith.constant 0 : i32
    %c0_i32_0 = arith.constant 0 : i32
    return %arg0, %arg1, %c0_i32 : i32, i32, i32
  }
}

</mosaic_0001>

<bundles_post_ra>
// kernel: tpu_custom_call.1
= control target key start
LH: loop header
LB: loop body
LE: loop exit
PB: predicated region body
PF: predicated region fallthrough
CT: control target
= control target key end

     0   :  { %7 = vsyncpa [#allocation3], 0  ;;  %s980_s0 = inlined_call_operand.hbm [shape: f32[2,4,256], index: 0, kind: input, shape index: {}]   ;;  %s981_s1 = inlined_call_operand.hbm [shape: f32[2,1,256], index: 1, kind: input, shape index: {}]   ;;  %s982_s2 = inlined_call_operand.hbm [shape: f32[2,4,256], index: 2, kind: output, shape index: {}]  }
   0x1   :  { %9 = vsyncpa [#allocation3 + $0x1], 0 }
   0x2   :  { %10 = vsyncpa [#allocation6], 0 }
   0x3   :  { %12 = vsyncpa [#allocation6 + $0x1], 0 }
   0x4   :  { %13 = vsyncpa [#allocation4], 0 }
   0x5   :  { %15 = vsyncpa [#allocation4 + $0x1], 0  ;;  %s729_s9 = smov 0   ;;  %s731_s10 = smov 0  }
   0x6   :  { %s733_s11 = smov 0   ;;  %s735_s12 = smov 0  }
   0x7   :  { %s737_s13 = smov 0   ;;  %s739_s14 = smov 0  }
   0x8 LB: > { %s463_s15 = sadd.s32 4294967295, %s708_s14   ;;  %s464_s16 = sadd.s32 4294967294, %s708_s14   ;;  %s708_s14 = sphi %s739_s14, %s21_s14   ;;  %s704_s13 = sphi %s737_s13, %s1004_s13   ;;  %s700_s12 = sphi %s735_s12, %s1003_s12   ;;  %s696_s11 = sphi %s733_s11, %s1002_s11   ;;  %s692_s10 = sphi %s731_s10, %s1001_s10   ;;  %s688_s9 = sphi %s729_s9, %s1000_s9  }
   0x9   : > { %s33_s17 = sadd.s32 1, %s704_s13  ;;  %s42_s18 = sadd.s32 1, %s696_s11 }
   0xa   : > { %p35_p0 = scmp.ge.s32.totalorder %s33_s17, 2  ;;  %p49_p1 = scmp.ne.s32.totalorder %s696_s11, %s692_s10 }
   0xb   : > { %p50_p2 = scmp.eq.s32.totalorder %s708_s14, 0  ;;  %p55_p3 = scmp.ne.s32.totalorder %s692_s10, %s688_s9 }
   0xc   : > { %s1006_s17 = smov (%p35_p0, %s33_s17), 0  ;;  %p56_p5 = scmp.eq.s32.totalorder %s463_s15, 0 }
   0xd   : > { %p770_p4 = por %p50_p2, %p49_p1  ;;  %s37_s20 = ssub.s32 %s704_s13, %s1006_s17 }
   0xe   : > { %p107_p6 = scmp.eq.s32.totalorder %s463_s15, 1  ;;  %p40_p7 = scmp.eq.s32.totalorder %s37_s20, 0 }
   0xf   : > { %p776_p8 = por %p56_p5, %p55_p3  ;;  %p113_p10 = scmp.eq.s32.totalorder %s464_s16, 1 }
  0x10   : > { %p780_p9 = por %p107_p6, %p49_p1  ;;  %p502_p13 = scmp.lt.s32.totalorder %s708_s14, 2 }
  0x11   : > { %s986_s21 = scalar_select %p776_p8, 1, 0 }
  0x12   : > { %s987_s22 = scalar_select %p780_p9, 1, 0 }
  0x13   : > { %s785_s23 = scalar_select %p40_p7, %s696_s11, %s42_s18  }
  0x14   : > { %p787_p11 = por %p113_p10, %p55_p3  ;;  %s794_s25 = sand.u32 1, %s696_s11  }
  0x15   : > { %s467_s26 = sshll.u32 %s794_s25, 3  ;;  %s482_s27 = sshll.u32 %s704_s13, 7 }
  0x16   : > { %s988_s24 = scalar_select %p787_p11, 1, 0 }
  0x17   : > { %s801_s30 = scalar_lea.hbm %s980_s0, %s482_s27  ;;  %s137_s3 = scalar_lea.vmem [#allocation2], %s467_s26 }
  0x18   : > { %s147_s4 = sshll.u32 %s137_s3, 4  ;;  %p807_p0 = pnand %p502_p13, %p770_p4  ;;  %s803_s4 = int_to_ptr.vmem [resolvable:$true] %s147_s4 }
  0x19   : > { %s134_s6 = scalar_lea.sflag [#allocation3], %s794_s25  ;;  %s562_s7 = scalar_lea.hbm %s801_s30, 128 }
  0x1a   : > { %p563_p3 = scmp.ne.s32.totalorder %s801_s30, %s562_s7  ;;  %p564_p5 = pneg %p807_p0 }
  0x1b   : > { %s567_s16 = scalar_lea.hbm %s980_s0, 256  ;;  %p568_p4 = scmp.lt.u32.totalorder %s801_s30, %s980_s0 }
  0x1c   : > { %p565_p6 = pnand %p564_p5, %p563_p3  ;;  %p569_p10 = scmp.lt.u32.totalorder %s567_s16, %s562_s7 }
  0x1d   : > { %p571_p12 = scmp.lt.u32.totalorder %s562_s7, %s801_s30 }
  0x1e   : > { %p566_p7 = pneg %p565_p6  ;;  %p570_p13 = por %p569_p10, %p568_p4 }
  0x20   : > { %p572_p1 = por %p571_p12, %p570_p13 }
  0x22   : > { %p573_p2 = pnand %p572_p1, %p566_p7 }
  0x24   : > { %576 = shalt.err (!%p573_p2)
}
  0x25   : > { %s577_s20 = scalar_lea.vmem %s803_s4, 128  ;;  %s710_s26 = smov [#allocation2]  }
  0x26   : > { %p578_p3 = scmp.ne.s32.totalorder %s803_s4, %s577_s20  ;;  %s582_s27 = sshll.u32 %s710_s26, 4  ;;  %s583_s27 = int_to_ptr.vmem [resolvable:$false] %s582_s27 }
  0x27   : > { %s584_s28 = scalar_lea.vmem %s583_s27, 256  ;;  %p585_p9 = scmp.lt.s32.totalorder %s803_s4, %s583_s27 }
  0x28   : > { %p580_p6 = pnand %p578_p3, %p564_p5  ;;  %p586_p4 = scmp.lt.s32.totalorder %s584_s28, %s577_s20 }
  0x2a   : > { %p581_p11 = pneg %p580_p6  ;;  %p587_p10 = por %p586_p4, %p585_p9 }
  0x2c   : > { %p588_p12 = pnand %p587_p10, %p581_p11 }
  0x2e   : > { %591 = shalt.err (!%p588_p12)
}
  0x2f   : > { %494 = dma.hbm_to_vmem [thread:$0]  (!%p807_p0), %s801_s30, 128, %s803_s4, %s134_s6  }
  0x30   : > { %p990_p1 = scmp.lt.s32.totalorder %s708_s14, 3  ;;  %p991_p2 = scmp.ge.s32.totalorder %s708_s14, 1 }
  0x31   : > { %s470_s3 = sshll.u32 %s794_s25, 1  ;;  %s483_s7 = sshll.u32 %s704_s13, 5 }
  0x32   : > { %p843_p7 = pnand %p991_p2, %p990_p1  ;;  %s852_s16 = scalar_lea.hbm %s981_s1, %s483_s7 }
  0x33   : > { %s158_s18 = scalar_lea.vmem [#allocation5], %s470_s3  ;;  %s155_s30 = scalar_lea.sflag [#allocation6], %s794_s25 }
  0x34   : > { %s992_s29 = scalar_select %p843_p7, 1, 0 }
  0x35   : > { %s166_s19 = sshll.u32 %s158_s18, 4  ;;  %s592_s4 = scalar_lea.hbm %s852_s16, 32  ;;  %s167_s19 = int_to_ptr.vmem [resolvable:$true] %s166_s19 }
  0x36   : > { %p593_p9 = scmp.ne.s32.totalorder %s852_s16, %s592_s4  ;;  %s597_s26 = scalar_lea.hbm %s981_s1, 64 }
  0x37   : > { %p598_p3 = scmp.lt.u32.totalorder %s852_s16, %s981_s1  ;;  %p599_p6 = scmp.lt.u32.totalorder %s597_s26, %s592_s4 }
  0x38   : > { %p595_p11 = pnand %p593_p9, %p564_p5  ;;  %p601_p10 = scmp.lt.u32.totalorder %s592_s4, %s852_s16 }
  0x39   : > { %p600_p4 = por %p599_p6, %p598_p3 }
  0x3a   : > { %p596_p13 = pneg %p595_p11 }
  0x3b   : > { %p602_p12 = por %p601_p10, %p600_p4 }
  0x3d   : > { %p603_p1 = pnand %p602_p12, %p596_p13 }
  0x3f   : > { %606 = shalt.err (!%p603_p1)
}
  0x40   : > { %s607_s25 = scalar_lea.vmem %s167_s19, 32  ;;  %s711_s3 = smov [#allocation5]  }
  0x41   : > { %p608_p2 = scmp.ne.s32.totalorder %s167_s19, %s607_s25  ;;  %s612_s7 = sshll.u32 %s711_s3, 4  ;;  %s613_s7 = int_to_ptr.vmem [resolvable:$false] %s612_s7 }
  0x42   : > { %s614_s8 = scalar_lea.vmem %s613_s7, 64  ;;  %p615_p8 = scmp.lt.s32.totalorder %s167_s19, %s613_s7 }
  0x43   : > { %p610_p9 = pnand %p608_p2, %p564_p5  ;;  %p616_p7 = scmp.lt.s32.totalorder %s614_s8, %s607_s25 }
  0x45   : > { %p611_p11 = pneg %p610_p9  ;;  %p617_p3 = por %p616_p7, %p615_p8 }
  0x47   : > { %p618_p6 = pnand %p617_p3, %p611_p11 }
  0x49   : > { %621 = shalt.err (!%p618_p6)
}
  0x4a   : > { %497 = dma.hbm_to_vmem [thread:$0]  (!%p807_p0), %s852_s16, 32, %s167_s19, %s155_s30  }
  0x4b   : > { %p993_p13 = scmp.ne.s32.totalorder %s992_s29, 0 }
  0x4c   : > { %s877_s15 = sand.u32 (!%p993_p13), 1, %s692_s10   ;;  %p994_p8 = scmp.ne.s32.totalorder (!%p993_p13), %s986_s21, 0 }
  0x4d   : > { %175 = sbr.rel (%p993_p13) target bundleno = 302 (0x12e), region = 28  ;;  %s474_s18 = sshll.u32 (!%p993_p13), %s877_s15, 3 }
  0x4e   : > { %s178_s4 = scalar_lea.sflag (!%p993_p13), [#allocation3], %s877_s15  ;;  %s181_s6 = scalar_lea.vmem (!%p993_p13), [#allocation2], %s474_s18 }
  0x54   : > { %675 = dma.done.wait (%p994_p8), %s178_s4, 128  }
  0x55   : > { %677 = vsyncadd (%p994_p8), %s178_s4, 4294967168  ;;  %s475_s5 = sshll.u32 %s877_s15, 1  ;;  %s187_s29 = scalar_lea.sflag [#allocation6], %s877_s15 }
  0x56   : > { %s190_s16 = scalar_lea.vmem [#allocation5], %s475_s5 }
  0x57   : > { %679 = dma.done.wait (%p994_p8), %s187_s29, 32  }
  0x58   : > { %681 = vsyncadd (%p994_p8), %s187_s29, 4294967264  ;;  %v219_v0 = vlaneseq  ;;  %vm235_vm0 = vcmask 1043456   ;;  %v217_v4 = vld [vmem:[%s190_s16] sm:$0x3]  ;;  %vm267_vm1 = vcmask 1040384   ;;  %v893_v5 = vld [vmem:[%s181_s6] sm:$0xff] }
  0x59   : > { %vm312_vm2 = vcmp.ne.f32.partialorder %v217_v4, 0.0  ;;  %v250_v8 = vcombine.high %v893_v5, %v893_v5  ;;  %v712_v9 = vmov 0   ;;  %v252_v11 = vsel %vm235_vm0, %v893_v5, 0.0  ;;  %s484_s21 = sshll.u32 %s700_s12, 7  ;;  %s215_s19 = scalar_lea.vmem [#allocation7], %s474_s18 }
  0x5a   : > { %v220_v1 = vshrl.u32 %v219_v0, 7  ;;  %v313_v10 = vsel %vm312_vm2, 1, %v712_v9  ;;  %v230_v12 = vmul.f32 %v893_v5, %v893_v5  ;;  %s356_s30 = sshll.u32 %s215_s19, 4  ;;  %s931_s27 = scalar_lea.hbm %s982_s2, %s484_s21  ;;  %s933_s30 = int_to_ptr.vmem [resolvable:$true] %s356_s30 }
  0x5b   : > { %v253_v18 = vsel %vm235_vm0, %v250_v8, 0.0  ;;  %s340_s28 = scalar_lea.sflag [#allocation4], %s877_s15  ;;  %s622_s12 = scalar_lea.vmem %s933_s30, 128 }
  0x5c   : > { %v221_v2 = vsub.s32 0, %v220_v1  ;;  %v225_v3 = vsub.s32 1, %v220_v1  ;;  %v254_v19 = vadd.f32 %v253_v18, %v252_v11  ;;  %v258_v22 = vcombine.high %v230_v12, %v230_v12  ;;  %p623_p0 = scmp.ne.s32.totalorder %s933_s30, %s622_s12  ;;  %p997_p5 = scmp.ne.s32.totalorder %s987_s22, 0 }
  0x5d   : > { %v260_v29 = vsel %vm235_vm0, %v230_v12, 0.0  ;;  %s713_s25 = smov [#allocation7]  }
  0x5e   : > { %v222_v6 = vrot.slane %v217_v4, %v221_v2  ;;  %v226_v7 = vrot.slane %v217_v4, %v225_v3  ;;  %v901_v15 = vrot.slane %v313_v10, %v225_v3  ;;  %255 = vadd.xlane.f32.xlu1 %v254_v19  ;;  %v261_v30 = vsel %vm235_vm0, %v258_v22, 0.0  ;;  %p624_p7 = pnand %p623_p0, %p997_p5  ;;  %s626_s3 = sshll.u32 %s713_s25, 4  ;;  %s627_s3 = int_to_ptr.vmem [resolvable:$false] %s626_s3 }
  0x5f   : > { %v262_v33 = vadd.f32 %v261_v30, %v260_v29  ;;  %v317_v41 = vrot.slane %v313_v10, %v221_v2  ;;  %s628_s7 = scalar_lea.vmem %s627_s3, 256  ;;  %p629_p10 = scmp.lt.s32.totalorder %s933_s30, %s627_s3 }
  0x60   : > { %v268_v13 = vsel %vm267_vm1, %v222_v6, 0.0  ;;  %v269_v14 = vsel %vm267_vm1, %v226_v7, 0.0  ;;  %v227_v17 = vcombine.low %v222_v6, %v226_v7  ;;  %vm323_vm6 = vcmp.eq.s32.totalorder %v901_v15, 1  ;;  %p625_p4 = pneg %p624_p7  ;;  %p630_p12 = scmp.lt.s32.totalorder %s628_s7, %s622_s12 }
  0x61   : > { %v270_v16 = vadd.f32 %v269_v14, %v268_v13  ;;  %vm911_vm5 = vcmp.eq.s32.totalorder %v317_v41, 1 }
  0x62   : > { %v229_v20 = vmul.f32 %v227_v17, %v893_v5  ;;  %v231_v21 = vmul.f32 %v230_v12, %v227_v17  ;;  %p631_p1 = por %p630_p12, %p629_p10 }
  0x63   : > { %271 = vadd.xlane.f32.xlu0 %v270_v16 }
  0x64   : > { %v233_v23 = vcombine.high %v229_v20, %v229_v20  ;;  %v236_v24 = vsel %vm235_vm0, %v229_v20, 0.0  ;;  %v242_v25 = vcombine.high %v231_v21, %v231_v21  ;;  %v244_v26 = vsel %vm235_vm0, %v231_v21, 0.0  ;;  %p632_p2 = pnand %p631_p1, %p625_p4 }
  0x66   : > { %v237_v27 = vsel %vm235_vm0, %v233_v23, 0.0  ;;  %v245_v28 = vsel %vm235_vm0, %v242_v25, 0.0 }
  0x67   : > { %v238_v31 = vadd.f32 %v237_v27, %v236_v24  ;;  %v246_v32 = vadd.f32 %v245_v28, %v244_v26 }
  0x69   : > { %239 = vadd.xlane.f32.xlu0 %v238_v31  ;;  %247 = vadd.xlane.f32.xlu1 %v246_v32 }
  0x6d   : > { %263 = vadd.xlane.f32.xlu0 %v262_v33 }
  0xeb   : > { %v256_v38 = vpop.xlane.xlu1 %255 }
  0xf0   : > { %v272_v34 = vpop.xlane.xlu0 %271 }
  0xf1   : > { %v273_v35 = vsub.f32 256.0, %v272_v34  ;;  %vm274_vm3 = vcmp.eq.f32.partialorder %v272_v34, 0.0 }
  0xf2   : > { %v275_v36 = vsel %vm274_vm3, 1.0, %v272_v34 }
  0xf3   : > { %vm276_vm4 = vcmp.eq.f32.partialorder %v273_v35, 0.0  ;;  %554 = vrcp.f32 %v275_v36 }
  0xf4   : > { %v277_v37 = vsel %vm276_vm4, 1.0, %v273_v35 }
  0xf5   : > { %556 = vrcp.f32 %v277_v37 }
  0xf6   : > { %v240_v39 = vpop.xlane.xlu0 %239  ;;  %v248_v48 = vpop.xlane.xlu1 %247 }
  0xf7   : > { %v282_v43 = vsub.f32 %v256_v38, %v240_v39 }
  0xfa   : > { %v264_v49 = vpop.xlane.xlu0 %263 }
  0xfb   : > { %v283_v56 = vsub.f32 %v264_v49, %v248_v48 }
  0xfd   : > { %v555_v40 = vpop.eup %554 }
  0xfe   : > { %v287_v42 = vrot.slane %v555_v40, %v221_v2 }
  0xff   : > { %v557_v44 = vpop.eup %556 }
 0x100   : > { %v292_v45 = vrot.slane %v557_v44, %v221_v2  ;;  %v288_v46 = vmul.f32 %v287_v42, %v240_v39 }
 0x102   : > { %v293_v50 = vmul.f32 %v292_v45, %v282_v43  ;;  %v294_v51 = vmul.f32 2.0, %v288_v46  ;;  %v297_v52 = vmul.f32 256.0, %v288_v46 }
 0x104   : > { %v295_v53 = vmul.f32 %v294_v51, %v240_v39  ;;  %v302_v54 = vmul.f32 2.0, %v293_v50  ;;  %v305_v55 = vmul.f32 256.0, %v293_v50  ;;  %v324_v57 = vsel %vm911_vm5, %v288_v46, %v293_v50 }
 0x105   : > { %v325_v58 = vsel %vm323_vm6, %v288_v46, %v293_v50  ;;  %v298_v60 = vmul.f32 %v297_v52, %v288_v46 }
 0x106   : > { %v296_v59 = vsub.f32 %v248_v48, %v295_v53  ;;  %v303_v61 = vmul.f32 %v302_v54, %v282_v43  ;;  %v330_v62 = vcombine.low %v324_v57, %v325_v58  ;;  %v306_v0 = vmul.f32 %v305_v55, %v293_v50 }
 0x108   : > { %v299_v63 = vadd.f32 %v298_v60, %v296_v59  ;;  %v304_v1 = vsub.f32 %v283_v56, %v303_v61  ;;  %v332_v12 = vsub.f32 %v893_v5, %v330_v62 }
 0x10a   : > { %v300_v2 = vmul.f32 %v299_v63, %v287_v42  ;;  %v307_v3 = vadd.f32 %v306_v0, %v304_v1 }
 0x10c   : > { %v301_v4 = vadd.f32 1e-05, %v300_v2  ;;  %v308_v6 = vmul.f32 %v307_v3, %v292_v45 }
 0x10e   : > { %v309_v7 = vadd.f32 1e-05, %v308_v6  ;;  %558 = vrsqrt.f32 %v301_v4 }
 0x110   : > { %560 = vrsqrt.f32 %v309_v7 }
 0x118   : > { %v559_v8 = vpop.eup %558 }
 0x11a   : > { %v561_v9 = vpop.eup %560 }
 0x11b   : > { %v326_v10 = vsel %vm911_vm5, %v559_v8, %v561_v9  ;;  %v327_v11 = vsel %vm323_vm6, %v559_v8, %v561_v9 }
 0x11c   : > { %v335_v13 = vcombine.low %v326_v10, %v327_v11 }
 0x11e   : > { %v337_v14 = vmul.f32 %v335_v13, %v332_v12 }
 0x120   : > { %338 = vst [vmem:[%s215_s19] sm:$0xff] %v337_v14 }
 0x121   : > { %635 = shalt.err (!%p632_p2)
}
 0x122   : > { %s636_s8 = scalar_lea.hbm %s931_s27, 128  ;;  %s640_s4 = scalar_lea.hbm %s982_s2, 256 }
 0x123   : > { %p637_p9 = scmp.ne.s32.totalorder %s931_s27, %s636_s8  ;;  %p641_p6 = scmp.lt.u32.totalorder %s931_s27, %s982_s2 }
 0x124   : > { %p642_p13 = scmp.lt.u32.totalorder %s640_s4, %s636_s8  ;;  %p644_p0 = scmp.lt.u32.totalorder %s636_s8, %s931_s27 }
 0x125   : > { %p638_p11 = pnand %p637_p9, %p997_p5 }
 0x126   : > { %p643_p8 = por %p642_p13, %p641_p6 }
 0x127   : > { %p639_p3 = pneg %p638_p11 }
 0x128   : > { %p645_p7 = por %p644_p0, %p643_p8 }
 0x12a   : > { %p646_p4 = pnand %p645_p7, %p639_p3 }
 0x12c   : > { %649 = shalt.err (!%p646_p4)
}
 0x12d   : > { %489 = dma.vmem_to_hbm [thread:$0]  (%p997_p5), %s933_s30, 128, %s931_s27, %s340_s28  }
 0x12e PF: > { %s368_s29 = sand.u32 1, %s688_s9   ;;  %p998_p10 = scmp.ne.s32.totalorder %s988_s24, 0 }
 0x12f   : > { %p999_p12 = scmp.ge.s32.totalorder %s708_s14, 2  ;;  %s369_s16 = scalar_lea.sflag [#allocation4], %s368_s29 }
 0x131   : > { %p499_p1 = pnand %p999_p12, %p998_p10 }
 0x133   : > { %683 = dma.done.wait (!%p499_p1), %s369_s16, 128  }
 0x134   : > { %685 = vsyncadd (!%p499_p1), %s369_s16, 4294967168  ;;  %s21_s14 = sadd.s32 1, %s708_s14   ;;  %s1000_s9 = smov %s692_s10 }
 0x135   : > { %p18_p2 = scmp.ge.s32.totalorder %s21_s14, 4   ;;  %s1001_s10 = smov %s696_s11 }
 0x136   : > { %s1002_s11 = smov %s785_s23  ;;  %s1003_s12 = smov %s704_s13 }
 0x137   : > { %s1004_s13 = smov %s1006_s17  ;;  %20 = sbr.rel (!%p18_p2) target bundleno = 8 (0x8), region = 86 }
 0x13e   :  { %374 = vsyncpa [#allocation3], 1 }
 0x13f   :  { %376 = vsyncpa [#allocation3 + $0x1], 1 }
 0x140   :  { %377 = vsyncpa [#allocation6], 1 }
 0x141   :  { %379 = vsyncpa [#allocation6 + $0x1], 1 }
 0x142   :  { %380 = vsyncpa [#allocation4], 1 }
 0x143   :  { %382 = vsyncpa [#allocation4 + $0x1], 1 }

</bundles_post_ra>
